<compile_context>
chip_gen: v5e
topology: v5e:2x2
jax: 0.10.0
libtpu: 0.0.40
codegen_flags: <defaults>
</compile_context>

<pallas_src>
import jax
import jax.numpy as jnp
from jax.experimental import pallas as pl
from jax.experimental.pallas import tpu as pltpu


def linear_gemv_kernel(x_ref, w_ref, b_ref, o_ref):
    # x_ref: (TB, IN) VMEM  -- batch tile, IN on the lane axis
    # w_ref: (1, IN)  VMEM  -- weight row (PyTorch (OUT, IN) layout), sublane-broadcast
    # b_ref: (1, 1)   SMEM  -- scalar bias
    # o_ref: (TB, 1)  VMEM  -- output tile, already in final (B, 1) layout
    prod = x_ref[...] * w_ref[...]                 # VPU elementwise (TB, IN)
    acc = jnp.sum(prod, axis=1, keepdims=True)     # XLU lane reduce -> (TB, 1)
    o_ref[...] = (acc + b_ref[0, 0]).astype(o_ref.dtype)


def _pick_batch_tile(batch):
    # Single block for small problems; (multiple-of-8) tiles with a parallel
    # grid once the batch is big enough for pipelining to matter.
    if batch <= 1024:
        return batch
    return 1024


def linear(x, w, b):
    """x: (B, IN) f32, w: (OUT, IN) f32 (PyTorch layout), b: (1, OUT) f32 -> (B, OUT)."""
    B, IN = x.shape
    OUT = w.shape[0]
    assert OUT == 1, "kernel specializes the OUT=1 GEMV of Net.fc"

    TB = _pick_batch_tile(B)
    grid = (pl.cdiv(B, TB),)

    flops = 2 * B * IN * OUT + B * OUT
    bytes_accessed = 4 * (B * IN + IN * OUT + OUT + B * OUT)

    return pl.pallas_call(
        linear_gemv_kernel,
        out_shape=jax.ShapeDtypeStruct((B, OUT), x.dtype),
        grid=grid,
        in_specs=[
            pl.BlockSpec((TB, IN), lambda i: (i, 0)),
            pl.BlockSpec((1, IN), lambda i: (0, 0)),
            pl.BlockSpec(memory_space=pltpu.MemorySpace.SMEM),
        ],
        out_specs=pl.BlockSpec((TB, OUT), lambda i: (i, 0)),
        compiler_params=pltpu.CompilerParams(
            dimension_semantics=("parallel",)),
        cost_estimate=pl.CostEstimate(
            flops=flops, transcendentals=0, bytes_accessed=bytes_accessed),
    )(x, w, b)


class NetPallas:
    """Equivalent of torch Net: single nn.Linear(10, 1)."""

    def __init__(self, key):
        in_features, out_features = 10, 1
        k_w, k_b = jax.random.split(key)
        # Deterministic init mimicking torch's default U(-1/sqrt(in), 1/sqrt(in)).
        bound = 1.0 / jnp.sqrt(jnp.float32(in_features))
        self.w = jax.random.uniform(
            k_w, (out_features, in_features), jnp.float32, -bound, bound
        )  # PyTorch layout (OUT, IN) -- used directly by the kernel
        b = jax.random.uniform(
            k_b, (out_features,), jnp.float32, -bound, bound
        )
        self.b = b.reshape(1, out_features)   # (1, 1) scalar bias for SMEM
        self._fn = jax.jit(linear)

    def __call__(self, x):
        return self._fn(x, self.w, self.b)


if __name__ == "__main__":
    key = jax.random.PRNGKey(0)
    k_param, k_x = jax.random.split(key)

    net = NetPallas(k_param)

    B, IN = 8, 10
    x = jax.random.normal(k_x, (B, IN), jnp.float32)

    out = jax.block_until_ready(net(x))

    # Reference check in plain JAX.
    ref = x @ net.w.T + net.b
    assert out.shape == (B, 1)
    assert jnp.allclose(out, ref, atol=1e-5, rtol=1e-5)

    print("KERNEL_OK")
</pallas_src>

<mosaic_0001>
module attributes {stable_mosaic.version = 11 : i64} {
  func.func @linear_gemv_kernel(%arg0: i32, %arg1: memref<8x10xf32, #tpu.memory_space<vmem>>, %arg2: memref<1x10xf32, #tpu.memory_space<vmem>>, %arg3: memref<1x1xf32, #tpu.memory_space<smem>>, %arg4: memref<8x1xf32, #tpu.memory_space<vmem>>) attributes {dimension_semantics = [#tpu.dimension_semantics<parallel>], iteration_bounds = array<i64: 1>, scalar_prefetch = 0 : i64, scratch_operands = 0 : i64, tpu.core_type = #tpu.core_type<tc>, window_params = [{transform_indices = @transform_0, window_bounds = array<i64: 8, 10>}, {pipeline_mode = #tpu.pipeline_mode<synchronous>, transform_indices = @transform_1, window_bounds = array<i64: 1, 10>}, {transform_indices = @transform_2, window_bounds = array<i64: 1, 1>}, {transform_indices = @transform_3, window_bounds = array<i64: 8, 1>}]} {
    %c0 = arith.constant 0 : index
    %c0_0 = arith.constant 0 : index
    %0 = vector.load %arg1[%c0, %c0_0] : memref<8x10xf32, #tpu.memory_space<vmem>>, vector<8x10xf32>
    %c0_1 = arith.constant 0 : index
    %c0_2 = arith.constant 0 : index
    %1 = vector.load %arg2[%c0_1, %c0_2] : memref<1x10xf32, #tpu.memory_space<vmem>>, vector<1x10xf32>
    %2 = vector.broadcast %1 : vector<1x10xf32> to vector<8x10xf32>
    %3 = arith.mulf %0, %2 : vector<8x10xf32>
    %cst = arith.constant dense<0.000000e+00> : vector<8xf32>
    %4 = vector.multi_reduction <add>, %3, %cst [1] : vector<8x10xf32> to vector<8xf32>
    %5 = vector.shape_cast %4 : vector<8xf32> to vector<8x1xf32>
    %c0_3 = arith.constant 0 : index
    %c0_4 = arith.constant 0 : index
    %6 = memref.load %arg3[%c0_3, %c0_4] : memref<1x1xf32, #tpu.memory_space<smem>>
    %7 = vector.broadcast %6 : f32 to vector<8x1xf32>
    %8 = arith.addf %5, %7 : vector<8x1xf32>
    %c0_5 = arith.constant 0 : index
    %c0_6 = arith.constant 0 : index
    %9 = vector.load %arg4[%c0_5, %c0_6] : memref<8x1xf32, #tpu.memory_space<vmem>>, vector<8x1xf32>
    tpu.vector_store %arg4[%c0_5, %c0_6], %8 {strides = array<i32>} : memref<8x1xf32, #tpu.memory_space<vmem>>, vector<8x1xf32>,
    return
  }
  func.func @transform_0(%arg0: i32) -> (i32, i32) {
    %c0_i32 = arith.constant 0 : i32
    %c0_i32_0 = arith.constant 0 : i32
    return %arg0, %c0_i32 : i32, i32
  }
  func.func @transform_1(%arg0: i32) -> (i32, i32) {
    %c0_i32 = arith.constant 0 : i32
    %c0_i32_0 = arith.constant 0 : i32
    %c0_i32_1 = arith.constant 0 : i32
    return %c0_i32, %c0_i32_0 : i32, i32
  }
  func.func @transform_2(%arg0: i32) -> (i32, i32) {
    %c0_i32 = arith.constant 0 : i32
    %c0_i32_0 = arith.constant 0 : i32
    %c0_i32_1 = arith.constant 0 : i32
    return %c0_i32, %c0_i32_0 : i32, i32
  }
  func.func @transform_3(%arg0: i32) -> (i32, i32) {
    %c0_i32 = arith.constant 0 : i32
    %c0_i32_0 = arith.constant 0 : i32
    return %arg0, %c0_i32 : i32, i32
  }
}

</mosaic_0001>

<bundles_post_ra>
// kernel: linear.1
= control target key start
LH: loop header
LB: loop body
LE: loop exit
PB: predicated region body
PF: predicated region fallthrough
CT: control target
= control target key end

     0   :  { %9 = vsyncpa [#allocation4], 0  ;;  %s77_s15 = smov [#allocation3]   ;;  %s110_s0 = inlined_call_operand.hbm [shape: f32[8,10], index: 0, kind: input, shape index: {}]   ;;  %s111_s1 = inlined_call_operand.vmem [shape: f32[1,10], index: 1, kind: input, shape index: {}]   ;;  %s112_s2 = inlined_call_operand.<no memory space> [shape: f32[1,1], index: 2, kind: input, shape index: {}]   ;;  %s113_s3 = inlined_call_operand.vmem [shape: f32[8,1], index: 3, kind: output, shape index: {}]  }
   0x1   :  { %s15_s14 = sshll.u32 %s110_s0, 4  ;;  %s17_s16 = sshll.u32 %s77_s15, 4  ;;  %s16_s14 = int_to_ptr.hbm [resolvable:$true] %s15_s14  ;;  %s18_s16 = int_to_ptr.vmem [resolvable:$true] %s17_s16 }
   0x2   :  { %20 = dma.hbm_to_vmem [thread:$0]  %s16_s14, 128, %s18_s16, [#allocation4]  }
   0x3   :  { %75 = dma.done.wait [#allocation4], 128  }
   0x4   :  { %76 = vsyncadd [#allocation4], 4294967168  ;;  %v29_v0 = vld [vmem:[#allocation3] sm:$0xff]  ;;  %vm35_vm0 = vcmask 80896   ;;  %v40_v4 = vstv %s112_s2  ;;  %vm42_vm1 = vcmask 7168  }
   0x5   :  { %v50_v1 = vld [vmem:[%s111_s1] ss:$0 sm:$0xff] }
   0x6   :  { %v34_v2 = vmul.f32 %v50_v1, %v29_v0 }
   0x8   :  { %v36_v3 = vsel %vm35_vm0, %v34_v2, 0.0 }
   0x9   :  { %37 = vadd.xlane.f32.xlu0 %v36_v3 }
  0x7c   :  { %v38_v5 = vpop.xlane.xlu0 %37 }
  0x7d   :  { %v41_v6 = vadd.f32 %v40_v4, %v38_v5 }
  0x7f   :  { %43 = vst.msk [vmem:[%s113_s3] sm:$0xff] %vm42_vm1, %v41_v6 }
  0x80   :  { %48 = vsyncpa [#allocation4], 1 }

</bundles_post_ra>
